<compile_context>
chip_gen: v5e
topology: v5e:2x2
jax: 0.10.0
libtpu: 0.0.40
codegen_flags: <defaults>
</compile_context>

<pallas_src>
import math

import jax
import jax.numpy as jnp
from jax.experimental import pallas as pl
from jax.experimental.pallas import tpu as pltpu

_LANE = 128
_SUBLANE = 8
# Per-block byte budget. With in+out double-buffering (4 buffers resident)
# this is 24 MiB, under the 32 MiB scoped-VMEM limit we request explicitly
# and well under physical VMEM on every generation (64/128/128 MiB).
_MAX_BLOCK_BYTES = 6 * 1024 * 1024
_VMEM_LIMIT_BYTES = 32 * 1024 * 1024
# Slab width used when the payload must be padded to a lane multiple.
_PAD_WIDTH = 512


def _copy_kernel(x_ref, o_ref):
    # Identity copy of one (tr, width) lane-dense tile — the entire "work"
    # implied by torch.view (which itself never touches the bytes).
    o_ref[...] = x_ref[...]


def _sublane_packing(itemsize):
    """Rows per packed-vreg group: 8 for 32-bit, 16 for bf16, 32 for int8/fp8."""
    if itemsize >= 4:
        return _SUBLANE
    return _SUBLANE * (4 // itemsize)


def _row_tile(rows, width, itemsize, packing):
    """Largest multiple-of-`packing` divisor of `rows` whose (tr, width) tile
    fits the byte budget; when the payload spans multiple blocks, keep the
    grid >= 4 steps so both v7x TensorCores get work (neutral on v5e/v6e)."""
    assert rows % packing == 0
    q = rows // packing
    cap_t = max(1, _MAX_BLOCK_BYTES // (packing * width * itemsize))
    if q > cap_t:                                  # payload bigger than one block
        cap_t = min(cap_t, max(1, q // 4))         # -> grid >= 4 (>= 2 for tiny q)
    t = 1
    for cand in range(min(q, cap_t), 0, -1):       # bounded by cap_t, not rows
        if q % cand == 0:
            t = cand
            break
    return t * packing


def _plan(total, itemsize):
    """Pick a lane-dense (rows, width) slab: width % 128 == 0 and
    rows % packing == 0 (full vregs, unmasked vector stores).
    Returns (rows, width, row_tile, padded_total)."""
    packing = _sublane_packing(itemsize)
    for width in (2048, 1024, 512, 256, 128):
        if total % width == 0 and (total // width) % packing == 0:
            rows = total // width
            return rows, width, _row_tile(rows, width, itemsize, packing), total
    # Non-aligned payload: pad up to a multiple of (_PAD_WIDTH * packing) so the
    # copy stays fully tiled and pipelined (no single whole-payload VMEM block).
    chunk = _PAD_WIDTH * packing
    padded = ((total + chunk - 1) // chunk) * chunk
    rows = padded // _PAD_WIDTH
    return rows, _PAD_WIDTH, _row_tile(rows, _PAD_WIDTH, itemsize, packing), padded


def _tiled_copy(x_flat, rows, width, tr):
    grid = rows // tr
    return pl.pallas_call(
        _copy_kernel,
        out_shape=jax.ShapeDtypeStruct((rows, width), x_flat.dtype),
        grid=(grid,),
        in_specs=[pl.BlockSpec((tr, width), lambda i: (i, 0))],
        out_specs=pl.BlockSpec((tr, width), lambda i: (i, 0)),
        compiler_params=pltpu.CompilerParams(
            dimension_semantics=("parallel",),     # shard row tiles across TCs (v7x)
            vmem_limit_bytes=_VMEM_LIMIT_BYTES,
        ),
    )(x_flat)


def reshape_forward(x, outer_shape, *, metadata_only=False):
    """Equivalent of Reshape(outer_shape).forward(x) for a contiguous input.

    metadata_only=True returns the free XLA view (the optimal path for a
    contiguous reshape); default runs the Pallas copy kernel.
    """
    b = x.shape[0]
    n = math.prod(x.shape[1:])
    n_out = math.prod(outer_shape)
    assert n == n_out, (
        f"cannot view input with {n} elements per batch as {outer_shape}"
    )
    out_shape = (b,) + tuple(outer_shape)

    if metadata_only:
        return x.reshape(out_shape)

    itemsize = jnp.dtype(x.dtype).itemsize
    total = b * n
    rows, width, tr, padded = _plan(total, itemsize)

    if padded == total:
        # Row-major flatten to a lane-dense slab (matches torch contiguous
        # .view semantics; batch folded into rows for full sublane occupancy).
        out_flat = _tiled_copy(x.reshape(rows, width), rows, width, tr)
        return out_flat.reshape(out_shape)

    # TODO(synk): replace pad+slice with a tiled main slab + tiny tail kernel
    # to avoid the extra wrapper-side pass for misaligned payloads.
    x1 = jnp.pad(x.reshape(total), (0, padded - total))
    out_flat = _tiled_copy(x1.reshape(rows, width), rows, width, tr)
    return out_flat.reshape(-1)[:total].reshape(out_shape)


if __name__ == "__main__":
    # Small NCHW input consistent with the module: (B=2, C=4, H=16, W=16).
    key = jax.random.PRNGKey(0)
    x = jax.random.normal(key, (2, 4, 16, 16), dtype=jnp.float32)

    # Reshape(outer_shape=(8, 128)): 4*16*16 == 8*128 == 1024 elems per batch.
    outer_shape = (8, 128)

    y = reshape_forward(x, outer_shape)
    y = jax.block_until_ready(y)

    # Verify against the pure-JAX reference (identical to torch .view).
    y_ref = x.reshape((x.shape[0],) + outer_shape)
    assert y.shape == (2, 8, 128), y.shape
    assert y.dtype == x.dtype
    assert bool(jnp.array_equal(y, y_ref))

    print("KERNEL_OK")
</pallas_src>

<mosaic_0001>
module attributes {stable_mosaic.version = 11 : i64} {
  func.func @_copy_kernel(%arg0: i32, %arg1: memref<8x256xf32, #tpu.memory_space<vmem>>, %arg2: memref<8x256xf32, #tpu.memory_space<vmem>>) attributes {dimension_semantics = [#tpu.dimension_semantics<parallel>], iteration_bounds = array<i64: 1>, scalar_prefetch = 0 : i64, scratch_operands = 0 : i64, tpu.core_type = #tpu.core_type<tc>, window_params = [{transform_indices = @transform_0, window_bounds = array<i64: 8, 256>}, {transform_indices = @transform_1, window_bounds = array<i64: 8, 256>}]} {
    %c0 = arith.constant 0 : index
    %c0_0 = arith.constant 0 : index
    %0 = vector.load %arg1[%c0, %c0_0] : memref<8x256xf32, #tpu.memory_space<vmem>>, vector<8x256xf32>
    %c0_1 = arith.constant 0 : index
    %c0_2 = arith.constant 0 : index
    %1 = vector.load %arg2[%c0_1, %c0_2] : memref<8x256xf32, #tpu.memory_space<vmem>>, vector<8x256xf32>
    tpu.vector_store %arg2[%c0_1, %c0_2], %0 {strides = array<i32>} : memref<8x256xf32, #tpu.memory_space<vmem>>, vector<8x256xf32>,
    return
  }
  func.func @transform_0(%arg0: i32) -> (i32, i32) {
    %c0_i32 = arith.constant 0 : i32
    %c0_i32_0 = arith.constant 0 : i32
    return %arg0, %c0_i32 : i32, i32
  }
  func.func @transform_1(%arg0: i32) -> (i32, i32) {
    %c0_i32 = arith.constant 0 : i32
    %c0_i32_0 = arith.constant 0 : i32
    return %arg0, %c0_i32 : i32, i32
  }
}

</mosaic_0001>

<bundles_post_ra>
// kernel: tpu_custom_call.1
= control target key start
LH: loop header
LB: loop body
LE: loop exit
PB: predicated region body
PF: predicated region fallthrough
CT: control target
= control target key end

     0   :  { %6 = vsyncpa [#allocation3], 0  ;;  %s116_s0 = inlined_call_operand.hbm [shape: f32[8,256], index: 0, kind: input, shape index: {}]   ;;  %s117_s1 = inlined_call_operand.hbm [shape: f32[8,256], index: 1, kind: output, shape index: {}]  }
   0x1   :  { %7 = vsyncpa [#allocation4], 0  ;;  %s13_s8 = sshll.u32 %s116_s0, 4  ;;  %s98_s9 = smov [#allocation2]   ;;  %s14_s8 = int_to_ptr.hbm [resolvable:$true] %s13_s8 }
   0x2   :  { %s15_s10 = sshll.u32 %s98_s9, 4  ;;  %s16_s10 = int_to_ptr.vmem [resolvable:$true] %s15_s10 }
   0x3   :  { %18 = dma.hbm_to_vmem [thread:$0]  %s14_s8, 256, %s16_s10, [#allocation3]  }
   0x4   :  { %94 = dma.done.wait [#allocation3], 256  }
   0x5   :  { %95 = vsyncadd [#allocation3], 4294967040  ;;  %s99_s11 = smov [#allocation5]   ;;  %s34_s15 = sshll.u32 %s117_s1, 4  ;;  %v23_v0 = vld [vmem:[#allocation2] sm:$0xff]  ;;  %v24_v1 = vld [vmem:[#allocation2 + $0x8] sm:$0xff]  ;;  %s35_s15 = int_to_ptr.hbm [resolvable:$true] %s34_s15 }
   0x6   :  { %s32_s12 = sshll.u32 %s99_s11, 4  ;;  %25 = vst [vmem:[#allocation5] sm:$0xff] %v23_v0  ;;  %s33_s12 = int_to_ptr.vmem [resolvable:$true] %s32_s12 }
   0x7   :  { %26 = vst [vmem:[#allocation5 + $0x8] sm:$0xff] %v24_v1 }
   0x8   :  { %37 = dma.vmem_to_hbm [thread:$0]  %s33_s12, 256, %s35_s15, [#allocation4]  }
   0x9   :  { %96 = dma.done.wait [#allocation4], 256  }
   0xa   :  { %97 = vsyncadd [#allocation4], 4294967040 }
   0xb   :  { %42 = vsyncpa [#allocation3], 1 }
   0xc   :  { %43 = vsyncpa [#allocation4], 1 }

</bundles_post_ra>
